<compile_context>
chip_gen: v7x
topology: tpu7x:2x2x1
jax: 0.10.0
libtpu: 0.0.40
codegen_flags: <defaults>
</compile_context>

<pallas_src>
import jax
import jax.numpy as jnp
from jax.experimental import pallas as pl
from jax.experimental.pallas import tpu as pltpu


def _logreg_kernel(params_ref, x_ref, o_ref):
    # params_ref: SMEM (2,) f32 -> [w, b] scalars of the 1->1 linear layer.
    # x_ref / o_ref: VMEM (tile_rows, lanes) lane-dense tiles of flattened x.
    w = params_ref[0]
    b = params_ref[1]
    x = x_ref[...]
    if x.dtype != jnp.float32:        # static at trace time; no-op for f32 input
        x = x.astype(jnp.float32)
    # For Linear(1, 1):  x @ W^T + b  ==  x * w + b  elementwise on the slab.
    # sigmoid's exp/recip ride the EUP slot -> free relative to the DMA path.
    o_ref[...] = jax.nn.sigmoid(x * w + b).astype(o_ref.dtype)


def logistic_regression_forward(x, w, b, *, lanes=1024, max_tile_rows=512):
    """x: (N, 1), w: (1, 1), b: (1,)  ->  (N, 1) = sigmoid(x @ w.T + b)."""
    n, f = x.shape
    assert f == 1, "LogisticRegressionModel expects a single input feature"
    out_dtype = x.dtype

    # --- lane-dense reshape: (N, 1) -> (rows_padded, lanes), lanes % 128 == 0 ---
    flat = x.reshape(-1)
    if flat.dtype != jnp.float32:
        flat = flat.astype(jnp.float32)   # keep all math in f32 (v5e: no bf16 VPU/EUP)
    total = flat.shape[0]

    rows = pl.cdiv(total, lanes)
    tile_rows = min(max_tile_rows, ((rows + 7) // 8) * 8)   # multiple of 8 sublanes
    rows_padded = pl.cdiv(rows, tile_rows) * tile_rows
    padded_total = rows_padded * lanes
    if padded_total != total:
        flat = jnp.pad(flat, (0, padded_total - total))
    slab = flat.reshape(rows_padded, lanes)

    # w, b packed as a tiny SMEM array -> no wasted (8,128) VMEM tiles / vld slots.
    params = jnp.concatenate(
        [jnp.asarray(w, jnp.float32).reshape(-1),
         jnp.asarray(b, jnp.float32).reshape(-1)])           # (2,) = [w, b]

    grid = (rows_padded // tile_rows,)
    out = pl.pallas_call(
        _logreg_kernel,
        out_shape=jax.ShapeDtypeStruct((rows_padded, lanes), jnp.float32),
        grid_spec=pltpu.PrefetchScalarGridSpec(
            num_scalar_prefetch=0,
            grid=grid,
            in_specs=[
                pl.BlockSpec(memory_space=pltpu.MemorySpace.SMEM),    # [w, b]
                pl.BlockSpec((tile_rows, lanes), lambda i: (i, 0)),   # x tile
            ],
            out_specs=pl.BlockSpec((tile_rows, lanes), lambda i: (i, 0)),
        ),
        compiler_params=pltpu.CompilerParams(
            # Row tiles are independent -> megacore / multi-TC sharding on v7x;
            # per-step footprint (<= 2 MiB/block, double-buffered) fits v7x's
            # 64 MiB VMEM with large headroom.
            dimension_semantics=("parallel",),
        ),
    )(params, slab)

    return out.reshape(-1)[:total].reshape(n, 1).astype(out_dtype)


if __name__ == "__main__":
    key = jax.random.PRNGKey(0)
    kx, kw, kb, kx2 = jax.random.split(key, 4)

    # Deterministic params (mimics torch.nn.Linear(1,1) uniform init range).
    w = jax.random.uniform(kw, (1, 1), jnp.float32, minval=-1.0, maxval=1.0)
    b = jax.random.uniform(kb, (1,), jnp.float32, minval=-1.0, maxval=1.0)

    # Small batch of scalar features, consistent with Linear(1, 1).
    x = jax.random.normal(kx, (8, 1), jnp.float32)
    y = logistic_regression_forward(x, w, b)
    jax.block_until_ready(y)
    y_ref = jax.nn.sigmoid(x @ w.T + b)
    assert y.shape == (8, 1)
    assert jnp.allclose(y, y_ref, atol=1e-6), "mismatch vs reference (N=8)"

    # Second check: non-multiple N with small tiles to exercise the multi-step
    # pipelined grid plus the pad/slice path.
    x2 = jax.random.normal(kx2, (2500, 1), jnp.float32)
    y2 = logistic_regression_forward(x2, w, b, lanes=128, max_tile_rows=8)
    jax.block_until_ready(y2)
    y2_ref = jax.nn.sigmoid(x2 @ w.T + b)
    assert y2.shape == (2500, 1)
    assert jnp.allclose(y2, y2_ref, atol=1e-6), "mismatch vs reference (N=2500)"

    print("KERNEL_OK")
</pallas_src>

<mosaic_0001>
module attributes {stable_mosaic.version = 11 : i64} {
  func.func @_logreg_kernel(%arg0: i32, %arg1: memref<2xf32, #tpu.memory_space<smem>>, %arg2: memref<8x1024xf32, #tpu.memory_space<vmem>>, %arg3: memref<8x1024xf32, #tpu.memory_space<vmem>>) attributes {dimension_semantics = [#tpu.dimension_semantics<parallel>], iteration_bounds = array<i64: 1>, scalar_prefetch = 0 : i64, scratch_operands = 0 : i64, tpu.core_type = #tpu.core_type<tc>, window_params = [{transform_indices = @transform_0, window_bounds = array<i64: 2>}, {transform_indices = @transform_1, window_bounds = array<i64: 8, 1024>}, {transform_indices = @transform_2, window_bounds = array<i64: 8, 1024>}]} {
    %c0 = arith.constant 0 : index
    %0 = memref.load %arg1[%c0] : memref<2xf32, #tpu.memory_space<smem>>
    %c1 = arith.constant 1 : index
    %1 = memref.load %arg1[%c1] : memref<2xf32, #tpu.memory_space<smem>>
    %c0_0 = arith.constant 0 : index
    %c0_1 = arith.constant 0 : index
    %2 = vector.load %arg2[%c0_0, %c0_1] : memref<8x1024xf32, #tpu.memory_space<vmem>>, vector<8x1024xf32>
    %3 = vector.broadcast %0 : f32 to vector<8x1024xf32>
    %4 = arith.mulf %2, %3 : vector<8x1024xf32>
    %5 = vector.broadcast %1 : f32 to vector<8x1024xf32>
    %6 = arith.addf %4, %5 : vector<8x1024xf32>
    %7 = arith.negf %6 : vector<8x1024xf32>
    %8 = math.exp %7 : vector<8x1024xf32>
    %cst = arith.constant 1.000000e+00 : f32
    %9 = vector.broadcast %cst : f32 to vector<8x1024xf32>
    %10 = arith.addf %9, %8 : vector<8x1024xf32>
    %11 = arith.divf %9, %10 : vector<8x1024xf32>
    %c0_2 = arith.constant 0 : index
    %c0_3 = arith.constant 0 : index
    %12 = vector.load %arg3[%c0_2, %c0_3] : memref<8x1024xf32, #tpu.memory_space<vmem>>, vector<8x1024xf32>
    tpu.vector_store %arg3[%c0_2, %c0_3], %11 {strides = array<i32>} : memref<8x1024xf32, #tpu.memory_space<vmem>>, vector<8x1024xf32>,
    return
  }
  func.func @transform_0(%arg0: i32) -> i32 {
    %c0_i32 = arith.constant 0 : i32
    %c0_i32_0 = arith.constant 0 : i32
    return %c0_i32 : i32
  }
  func.func @transform_1(%arg0: i32) -> (i32, i32) {
    %c0_i32 = arith.constant 0 : i32
    %c0_i32_0 = arith.constant 0 : i32
    return %arg0, %c0_i32 : i32, i32
  }
  func.func @transform_2(%arg0: i32) -> (i32, i32) {
    %c0_i32 = arith.constant 0 : i32
    %c0_i32_0 = arith.constant 0 : i32
    return %arg0, %c0_i32 : i32, i32
  }
}

</mosaic_0001>

<bundles_post_ra>
// kernel: tpu_custom_call.1
= control target key start
LH: loop header
LB: loop body
LE: loop exit
PB: predicated region body
PF: predicated region fallthrough
CT: control target
= control target key end

     0   :  { %7 = vsyncpa [#allocation5], 0  ;;  %s293_s0 = inlined_call_operand.hbm [shape: f32[2], index: 0, kind: input, shape index: {}]   ;;  %s294_s1 = inlined_call_operand.hbm [shape: f32[8,1024], index: 1, kind: input, shape index: {}]   ;;  %s295_s2 = inlined_call_operand.hbm [shape: f32[8,1024], index: 2, kind: output, shape index: {}]  }
   0x1   :  { %8 = vsyncpa [#allocation3], 0 }
   0x2   :  { %9 = vsyncpa [#allocation4], 0  ;;  %s179_s11 = scalar_lea.hbm %s293_s0, 16 }
   0x3   :  { %p180_p0 = scmp.ne.s32.totalorder %s293_s0, %s179_s11  ;;  %p183_p1 = scmp.lt.u32.totalorder %s179_s11, %s293_s0 }
   0x5   :  { %p185_p2 = pnand %p183_p1, %p180_p0 }
   0x7   :  { %188 = shalt.err (!%p185_p2)
}
   0x8   :  { %s239_s16 = smov [#allocation2]   ;;  %s240_s19 = smov [#allocation6]  }
   0x9   :  { %17 = dma.hbm_to_smem %s293_s0, 16, %s239_s16, [#allocation5]  }
   0xa   :  { %s24_s20 = sshll.u32 %s240_s19, 4  ;;  %s189_s23 = scalar_lea.hbm %s294_s1, 1024  ;;  %s25_s20 = int_to_ptr.vmem [resolvable:$true] %s24_s20 }
   0xb   :  { %p190_p3 = scmp.ne.s32.totalorder %s294_s1, %s189_s23  ;;  %p193_p4 = scmp.lt.u32.totalorder %s189_s23, %s294_s1 }
   0xd   :  { %p195_p5 = pnand %p193_p4, %p190_p3 }
   0xf   :  { %198 = shalt.err (!%p195_p5)
}
  0x10   :  { %s199_s28 = scalar_lea.vmem %s25_s20, 1024  ;;  %p204_p7 = scmp.lt.s32.totalorder %s25_s20, %s25_s20 }
  0x11   :  { %p200_p6 = scmp.ne.s32.totalorder %s25_s20, %s199_s28  ;;  %p205_p8 = scmp.lt.s32.totalorder %s199_s28, %s199_s28 }
  0x13   :  { %p206_p9 = por %p205_p8, %p204_p7 }
  0x15   :  { %p207_p10 = pnand %p206_p9, %p200_p6 }
  0x17   :  { %210 = shalt.err (!%p207_p10)
}
  0x18   :  { %27 = dma.hbm_to_vmem [thread:$0]  %s294_s1, 1024, %s25_s20, [#allocation3]  }
  0x19   :  { %233 = dma.done.wait [#allocation5], 16  }
  0x1a   :  { %234 = vsyncadd [#allocation5], 4294967280 }
  0x1b   :  { %235 = dma.done.wait [#allocation3], 1024  }
  0x1c   :  { %236 = vsyncadd [#allocation3], 4294966272 }
  0x1d   :  { %34 = sfence }
  0x1e   :  { %s35_s30 = sld [smem:[#allocation2]]  ;;  %s135_s3 = sld [smem:[#allocation2 + $0x1]]  ;;  %v37_v0 = vld [vmem:[#allocation6] sm:$0xff]  ;;  %v38_v1 = vld [vmem:[#allocation6 + $0x8] sm:$0xff]  ;;  %v39_v2 = vld [vmem:[#allocation6 + $0x10] sm:$0xff] }
  0x1f   :  { %v40_v3 = vld [vmem:[#allocation6 + $0x18] sm:$0xff]  ;;  %v41_v4 = vld [vmem:[#allocation6 + $0x20] sm:$0xff]  ;;  %v42_v5 = vld [vmem:[#allocation6 + $0x28] sm:$0xff]  ;;  %s241_s1 = smov [#allocation7]  }
  0x20   :  { %v43_v6 = vld [vmem:[#allocation6 + $0x30] sm:$0xff]  ;;  %v44_v7 = vld [vmem:[#allocation6 + $0x38] sm:$0xff]  ;;  %s125_s4 = sshll.u32 %s241_s1, 4  ;;  %s126_s4 = int_to_ptr.vmem [resolvable:$true] %s125_s4 }
  0x21   :  { %s211_s5 = scalar_lea.vmem %s126_s4, 1024  ;;  %p216_p12 = scmp.lt.s32.totalorder %s126_s4, %s126_s4 }
  0x22   :  { %p212_p11 = scmp.ne.s32.totalorder %s126_s4, %s211_s5  ;;  %p217_p13 = scmp.lt.s32.totalorder %s211_s5, %s211_s5 }
  0x24   :  { %v45_v8 = vstv %s35_s30  ;;  %v54_v9 = vstv %s135_s3  ;;  %p218_p0 = por %p217_p13, %p216_p12 }
  0x25   :  { %v46_v10 = vmul.f32 %v45_v8, %v37_v0  ;;  %v47_v11 = vmul.f32 %v45_v8, %v38_v1  ;;  %v48_v12 = vmul.f32 %v45_v8, %v39_v2  ;;  %v49_v13 = vmul.f32 %v45_v8, %v40_v3 }
  0x26   :  { %v50_v14 = vmul.f32 %v45_v8, %v41_v4  ;;  %v51_v15 = vmul.f32 %v45_v8, %v42_v5  ;;  %v52_v16 = vmul.f32 %v45_v8, %v43_v6  ;;  %v53_v17 = vmul.f32 %v45_v8, %v44_v7  ;;  %p219_p1 = pnand %p218_p0, %p212_p11 }
  0x27   :  { %v55_v18 = vadd.f32 %v54_v9, %v46_v10  ;;  %v56_v19 = vadd.f32 %v54_v9, %v47_v11  ;;  %v57_v20 = vadd.f32 %v54_v9, %v48_v12  ;;  %v58_v21 = vadd.f32 %v54_v9, %v49_v13 }
  0x28   :  { %v59_v22 = vadd.f32 %v54_v9, %v50_v14  ;;  %v60_v23 = vadd.f32 %v54_v9, %v51_v15  ;;  %v61_v27 = vadd.f32 %v54_v9, %v52_v16  ;;  %v62_v29 = vadd.f32 %v54_v9, %v53_v17 }
  0x29   :  { %v136_v24 = vmul.f32 -1.442695, %v55_v18  ;;  %v137_v25 = vmul.f32 -1.442695, %v56_v19  ;;  %v138_v26 = vmul.f32 -1.442695, %v57_v20 }
  0x2a   :  { %v139_v28 = vmul.f32 -1.442695, %v58_v21  ;;  %v140_v30 = vmul.f32 -1.442695, %v59_v22  ;;  %v141_v31 = vmul.f32 -1.442695, %v60_v23 }
  0x2b   :  { %147 = vpow2.f32 %v136_v24  ;;  %v142_v32 = vmul.f32 -1.442695, %v61_v27  ;;  %v143_v33 = vmul.f32 -1.442695, %v62_v29 }
  0x2c   :  { %149 = vpow2.f32 %v137_v25 }
  0x2d   :  { %151 = vpow2.f32 %v138_v26 }
  0x2e   :  { %153 = vpow2.f32 %v139_v28 }
  0x2f   :  { %155 = vpow2.f32 %v140_v30 }
  0x30   :  { %157 = vpow2.f32 %v141_v31 }
  0x31   :  { %159 = vpow2.f32 %v142_v32 }
  0x32   :  { %161 = vpow2.f32 %v143_v33 }
  0x35   :  { %v148_v34 = vpop.eup %147 }
  0x36   :  { %v150_v35 = vpop.eup %149  ;;  %v87_v36 = vadd.f32 1.0, %v148_v34 }
  0x37   :  { %v152_v37 = vpop.eup %151  ;;  %v88_v38 = vadd.f32 1.0, %v150_v35 }
  0x38   :  { %v154_v39 = vpop.eup %153  ;;  %163 = vrcp.f32 %v87_v36  ;;  %v89_v40 = vadd.f32 1.0, %v152_v37 }
  0x39   :  { %v156_v41 = vpop.eup %155  ;;  %165 = vrcp.f32 %v88_v38  ;;  %v90_v42 = vadd.f32 1.0, %v154_v39 }
  0x3a   :  { %v158_v43 = vpop.eup %157  ;;  %167 = vrcp.f32 %v89_v40  ;;  %v91_v44 = vadd.f32 1.0, %v156_v41 }
  0x3b   :  { %v160_v45 = vpop.eup %159  ;;  %169 = vrcp.f32 %v90_v42  ;;  %v92_v46 = vadd.f32 1.0, %v158_v43 }
  0x3c   :  { %v162_v47 = vpop.eup %161  ;;  %171 = vrcp.f32 %v91_v44  ;;  %v93_v48 = vadd.f32 1.0, %v160_v45 }
  0x3d   :  { %173 = vrcp.f32 %v92_v46  ;;  %v94_v49 = vadd.f32 1.0, %v162_v47 }
  0x3e   :  { %175 = vrcp.f32 %v93_v48 }
  0x3f   :  { %177 = vrcp.f32 %v94_v49 }
  0x42   :  { %v164_v50 = vpop.eup %163 }
  0x43   :  { %v166_v51 = vpop.eup %165  ;;  %111 = vst [vmem:[#allocation7] sm:$0xff] %v164_v50 }
  0x44   :  { %v168_v52 = vpop.eup %167  ;;  %112 = vst [vmem:[#allocation7 + $0x8] sm:$0xff] %v166_v51 }
  0x45   :  { %v170_v53 = vpop.eup %169  ;;  %113 = vst [vmem:[#allocation7 + $0x10] sm:$0xff] %v168_v52 }
  0x46   :  { %v172_v54 = vpop.eup %171  ;;  %114 = vst [vmem:[#allocation7 + $0x18] sm:$0xff] %v170_v53 }
  0x47   :  { %v174_v55 = vpop.eup %173  ;;  %115 = vst [vmem:[#allocation7 + $0x20] sm:$0xff] %v172_v54 }
  0x48   :  { %v176_v56 = vpop.eup %175  ;;  %116 = vst [vmem:[#allocation7 + $0x28] sm:$0xff] %v174_v55 }
  0x49   :  { %v178_v57 = vpop.eup %177  ;;  %117 = vst [vmem:[#allocation7 + $0x30] sm:$0xff] %v176_v56 }
  0x4a   :  { %118 = vst [vmem:[#allocation7 + $0x38] sm:$0xff] %v178_v57 }
  0x4b   :  { %222 = shalt.err (!%p219_p1)
}
  0x4c   :  { %s223_s8 = scalar_lea.hbm %s295_s2, 1024 }
  0x4d   :  { %p224_p2 = scmp.ne.s32.totalorder %s295_s2, %s223_s8  ;;  %p227_p3 = scmp.lt.u32.totalorder %s223_s8, %s295_s2 }
  0x4f   :  { %p229_p4 = pnand %p227_p3, %p224_p2 }
  0x51   :  { %232 = shalt.err (!%p229_p4)
}
  0x52   :  { %128 = dma.vmem_to_hbm [thread:$0]  %s126_s4, 1024, %s295_s2, [#allocation4]  }
  0x53   :  { %237 = dma.done.wait [#allocation4], 1024  }
  0x54   :  { %238 = vsyncadd [#allocation4], 4294966272 }
  0x55   :  { %132 = vsyncpa [#allocation3], 1 }
  0x56   :  { %133 = vsyncpa [#allocation4], 1 }
  0x57   :  { %134 = vsyncpa [#allocation5], 1 }

</bundles_post_ra>
